<compile_context>
chip_gen: v7x
topology: tpu7x:2x2x1
jax: 0.10.0
libtpu: 0.0.40
codegen_flags: <defaults>
</compile_context>

<pallas_src>
import functools
import math
from typing import NamedTuple

import jax
import jax.numpy as jnp
from jax.experimental import pallas as pl
from jax.experimental.pallas import tpu as pltpu


# ---------------------------------------------------------------------------
# helpers
# ---------------------------------------------------------------------------
def _round_up(x, m):
    return ((x + m - 1) // m) * m


def _nbytes(shape, dtype):
    return math.prod(shape) * jnp.dtype(dtype).itemsize


def _vmem_limit(resident_bytes, streamed_bytes):
    """Resident (single-buffer) + double-buffered streamed tiles + headroom,
    clamped to ~85% of this generation's physical VMEM."""
    try:
        cap = int(pltpu.get_tpu_info().vmem_capacity_bytes)
    except Exception:  # pragma: no cover - conservative fallback (v7x per-TC)
        cap = 64 << 20
    need = resident_bytes + 2 * streamed_bytes + (4 << 20)
    return int(min(max(need, 16 << 20), int(cap * 0.85)))


def _pad_rows(a, rows):
    if a.shape[0] == rows:
        return a
    return jnp.zeros((rows,) + a.shape[1:], a.dtype).at[: a.shape[0]].set(a)


def _batch_tiling(batch):
    # Multiple of 16 so bf16 row tiles fill whole sublane groups; cap at 256.
    tm = min(_round_up(batch, 16), 256)
    return tm, _round_up(batch, tm)


def _softplus(x):
    # Branchless softplus; equals torch Softplus(beta=1, threshold=20) to
    # within f32 roundoff.  exp/log1p go to the EUP.
    return jnp.maximum(x, 0.0) + jnp.log1p(jnp.exp(-jnp.abs(x)))


@functools.cache
def _resident_pipeline_mode():
    """pl.Buffered(1) for constant-index (resident) operands if this Pallas
    build supports pipeline_mode on pallas_call BlockSpecs, else None."""
    def _probe(x_ref, o_ref):
        o_ref[...] = x_ref[...] * 2.0

    try:
        out = pl.pallas_call(
            _probe,
            out_shape=jax.ShapeDtypeStruct((8, 128), jnp.float32),
            grid=(1,),
            in_specs=[pl.BlockSpec((8, 128), lambda i: (0, 0),
                                   pipeline_mode=pl.Buffered(1))],
            out_specs=pl.BlockSpec((8, 128), lambda i: (0, 0)),
        )(jnp.zeros((8, 128), jnp.float32))
        jax.block_until_ready(out)
        return pl.Buffered(1)
    except Exception:
        return None


def _resident_spec(block_shape, index_map):
    mode = _resident_pipeline_mode()
    if mode is None:
        return pl.BlockSpec(block_shape, index_map)
    return pl.BlockSpec(block_shape, index_map, pipeline_mode=mode)


# ---------------------------------------------------------------------------
# prepared (pre-cast / pre-fused / pre-padded) parameters
# ---------------------------------------------------------------------------
class EncPrep(NamedTuple):
    w1: jax.Array          # (k_pad, hidden_dim) bf16, zero-padded rows
    b1: jax.Array          # (1, hidden_dim) f32
    w2: jax.Array          # (hidden_dim, 2*z_dim) bf16  == [W21 | W22]
    b2: jax.Array          # (1, 2*z_dim) f32
    in_channel: int
    hidden_dim: int
    z_dim: int
    tk: int


class DecPrep(NamedTuple):
    w1c: jax.Array         # (z_dim, hidden_dim + cls_pad) bf16 == [Wd1 | Wc_pad]
    b1c: jax.Array         # (1, hidden_dim + cls_pad) f32
    wd2: jax.Array         # (hidden_dim, n_pad) bf16, zero-padded columns
    bd2: jax.Array         # (1, n_pad) f32
    hidden_dim: int
    z_dim: int
    dec_out: int
    out_channel: int
    cls_pad: int
    tn: int


def prepare_params(params, *, tile_k=None, tile_n=None):
    """One-time weight prep (bf16 cast, head fusion, tiling pads).  Do NOT call
    this per forward pass -- the whole point is keeping weight HBM traffic at
    1x bf16 bytes."""
    (w1, b1, w21, b21, w22, b22), (wd1, bd1, wd2, bd2), (wc, bc) = params
    in_channel, hidden_dim = w1.shape
    z_dim = w21.shape[1]
    dec_out = wd2.shape[1]
    out_channel = wc.shape[1]

    # ---- encoder: K-tiled fc1 + fused fc21|fc22 head ----
    tk = tile_k if tile_k is not None else min(_round_up(in_channel, 128), 2048)
    tk = _round_up(tk, 128)
    k_pad = _round_up(in_channel, tk)
    w1b = jnp.zeros((k_pad, hidden_dim), jnp.bfloat16)
    w1b = w1b.at[:in_channel].set(w1.astype(jnp.bfloat16))
    b1b = b1.reshape(1, hidden_dim).astype(jnp.float32)
    w2b = jnp.concatenate([w21, w22], axis=1).astype(jnp.bfloat16)
    b2b = jnp.concatenate([b21, b22]).reshape(1, 2 * z_dim).astype(jnp.float32)
    enc = EncPrep(w1b, b1b, w2b, b2b, in_channel, hidden_dim, z_dim, tk)

    # ---- decoder: classifier fused into fc1's output columns, N-tiled fc2 ----
    cls_pad = _round_up(out_channel, 128)
    hc = hidden_dim + cls_pad
    w1c = jnp.zeros((z_dim, hc), jnp.bfloat16)
    w1c = w1c.at[:, :hidden_dim].set(wd1.astype(jnp.bfloat16))
    w1c = w1c.at[:, hidden_dim:hidden_dim + out_channel].set(wc.astype(jnp.bfloat16))
    b1c = jnp.zeros((1, hc), jnp.float32)
    b1c = b1c.at[:, :hidden_dim].set(bd1.astype(jnp.float32))
    b1c = b1c.at[:, hidden_dim:hidden_dim + out_channel].set(bc.astype(jnp.float32))

    tn = tile_n if tile_n is not None else min(_round_up(dec_out, 128), 2048)
    tn = _round_up(tn, 128)
    n_pad = _round_up(dec_out, tn)
    wd2b = jnp.zeros((hidden_dim, n_pad), jnp.bfloat16)
    wd2b = wd2b.at[:, :dec_out].set(wd2.astype(jnp.bfloat16))
    bd2b = jnp.zeros((1, n_pad), jnp.float32).at[:, :dec_out].set(bd2)
    dec = DecPrep(w1c, b1c, wd2b, bd2b, hidden_dim, z_dim, dec_out,
                  out_channel, cls_pad, tn)
    return enc, dec


# ---------------------------------------------------------------------------
# kernels
# ---------------------------------------------------------------------------
def _encoder_kernel(x_ref, w1_ref, b1_ref, w2_ref, b2_ref,
                    zloc_ref, zscale_ref, acc_ref):
    k = pl.program_id(1)

    @pl.when(k == 0)
    def _():
        acc_ref[...] = jnp.zeros_like(acc_ref)

    # fc1 partial: stream a (tk, hidden) slice of W1 per step, f32 accumulate.
    acc_ref[...] += jnp.dot(x_ref[...], w1_ref[...],
                            preferred_element_type=jnp.float32)

    @pl.when(k == pl.num_programs(1) - 1)
    def _():
        z_dim = zloc_ref.shape[-1]
        hidden = _softplus(acc_ref[...] + b1_ref[...]).astype(jnp.bfloat16)
        # fused fc21|fc22 head: one N = 2*z_dim matmul
        y = jnp.dot(hidden, w2_ref[...],
                    preferred_element_type=jnp.float32) + b2_ref[...]
        zloc_ref[...] = y[:, :z_dim]
        zscale_ref[...] = jnp.exp(y[:, z_dim:])


def _decoder_classifier_kernel(z_ref, w1c_ref, b1c_ref, wd2_ref, bd2_ref,
                               dec_ref, cls_ref, hid_ref):
    hidden_dim = hid_ref.shape[-1]

    # fc1 + classifier (fused columns) once per batch tile; reuse across the
    # Wd2 column stream.
    @pl.when(pl.program_id(1) == 0)
    def _():
        y = jnp.dot(z_ref[...], w1c_ref[...],
                    preferred_element_type=jnp.float32) + b1c_ref[...]
        hid_ref[...] = _softplus(y[:, :hidden_dim]).astype(jnp.bfloat16)
        cls_ref[...] = y[:, hidden_dim:]

    d_pre = jnp.dot(hid_ref[...], wd2_ref[...],
                    preferred_element_type=jnp.float32) + bd2_ref[...]
    # sigmoid with the divide on the EUP (exp already there); VPU stays free.
    dec_ref[...] = pl.reciprocal(1.0 + jnp.exp(-d_pre), approx=True)


# ---------------------------------------------------------------------------
# wrappers
# ---------------------------------------------------------------------------
def vae_encoder_forward(x, enc: EncPrep):
    """x: (B, C, H, W) f32 -> (z_loc, z_scale), each (B, z_dim) f32."""
    B = x.shape[0]
    x_flat = x.reshape(B, -1)
    assert x_flat.shape[1] == enc.in_channel, (x_flat.shape, enc.in_channel)

    k_pad, hidden_dim = enc.w1.shape
    z_dim, tk = enc.z_dim, enc.tk
    tm, b_pad = _batch_tiling(B)

    x_p = jnp.zeros((b_pad, k_pad), jnp.bfloat16)
    x_p = x_p.at[:B, :enc.in_channel].set(x_flat.astype(jnp.bfloat16))

    grid = (b_pad // tm, k_pad // tk)

    resident = (_nbytes(enc.w2.shape, enc.w2.dtype)
                + _nbytes(enc.b1.shape, enc.b1.dtype)
                + _nbytes(enc.b2.shape, enc.b2.dtype)
                + _nbytes((tm, hidden_dim), jnp.float32))          # acc scratch
    streamed = (_nbytes((tm, tk), jnp.bfloat16)
                + _nbytes((tk, hidden_dim), jnp.bfloat16)
                + 2 * _nbytes((tm, z_dim), jnp.float32))

    z_loc, z_scale = pl.pallas_call(
        _encoder_kernel,
        out_shape=(jax.ShapeDtypeStruct((b_pad, z_dim), jnp.float32),
                   jax.ShapeDtypeStruct((b_pad, z_dim), jnp.float32)),
        grid=grid,
        in_specs=[
            pl.BlockSpec((tm, tk), lambda i, k: (i, k)),           # x tile
            pl.BlockSpec((tk, hidden_dim), lambda i, k: (k, 0)),   # W1 stream
            _resident_spec((1, hidden_dim), lambda i, k: (0, 0)),
            _resident_spec((hidden_dim, 2 * z_dim), lambda i, k: (0, 0)),
            _resident_spec((1, 2 * z_dim), lambda i, k: (0, 0)),
        ],
        out_specs=(pl.BlockSpec((tm, z_dim), lambda i, k: (i, 0)),
                   pl.BlockSpec((tm, z_dim), lambda i, k: (i, 0))),
        scratch_shapes=[pltpu.VMEM((tm, hidden_dim), jnp.float32)],
        compiler_params=pltpu.CompilerParams(
            dimension_semantics=("parallel", "arbitrary"),
            vmem_limit_bytes=_vmem_limit(resident, streamed)),
    )(x_p, enc.w1, enc.b1, enc.w2, enc.b2)

    return z_loc[:B], z_scale[:B]


def vae_decoder_classifier_forward(z, dec: DecPrep):
    """z: (B, z_dim) f32 -> (decode (B, dec_out), class_output (B, out_channel))."""
    B, z_dim = z.shape
    assert z_dim == dec.z_dim
    hidden_dim, cls_pad, tn = dec.hidden_dim, dec.cls_pad, dec.tn
    hc = hidden_dim + cls_pad
    n_pad = dec.wd2.shape[1]

    tm, b_pad = _batch_tiling(B)
    z_p = _pad_rows(z.astype(jnp.bfloat16), b_pad)
    grid = (b_pad // tm, n_pad // tn)

    resident = (_nbytes(dec.w1c.shape, dec.w1c.dtype)
                + _nbytes(dec.b1c.shape, dec.b1c.dtype)
                + _nbytes((tm, hidden_dim), jnp.bfloat16)          # hidden scratch
                + _nbytes((tm, z_dim), jnp.bfloat16)
                + _nbytes((tm, cls_pad), jnp.float32))
    streamed = (_nbytes((hidden_dim, tn), jnp.bfloat16)
                + _nbytes((1, tn), jnp.float32)
                + _nbytes((tm, tn), jnp.float32))

    decode, cls_out = pl.pallas_call(
        _decoder_classifier_kernel,
        out_shape=(jax.ShapeDtypeStruct((b_pad, n_pad), jnp.float32),
                   jax.ShapeDtypeStruct((b_pad, cls_pad), jnp.float32)),
        grid=grid,
        in_specs=[
            pl.BlockSpec((tm, z_dim), lambda i, j: (i, 0)),
            _resident_spec((z_dim, hc), lambda i, j: (0, 0)),      # [Wd1|Wc]
            _resident_spec((1, hc), lambda i, j: (0, 0)),
            pl.BlockSpec((hidden_dim, tn), lambda i, j: (0, j)),   # Wd2 stream
            pl.BlockSpec((1, tn), lambda i, j: (0, j)),
        ],
        out_specs=(pl.BlockSpec((tm, tn), lambda i, j: (i, j)),
                   pl.BlockSpec((tm, cls_pad), lambda i, j: (i, 0))),
        scratch_shapes=[pltpu.VMEM((tm, hidden_dim), jnp.bfloat16)],
        compiler_params=pltpu.CompilerParams(
            # N axis stays "arbitrary": the hidden/cls scratch is produced at
            # j == 0 and reused by later j on the same core.
            dimension_semantics=("parallel", "arbitrary"),
            vmem_limit_bytes=_vmem_limit(resident, streamed)),
    )(z_p, dec.w1c, dec.b1c, dec.wd2, dec.bd2)

    return decode[:B, :dec.dec_out], cls_out[:B, :dec.out_channel]


def vae_encoding_forward(x, prepared, key):
    """Full VAE_Encoding forward: returns (decode, class_output)."""
    enc_prep, dec_prep = prepared
    z_loc, z_scale = vae_encoder_forward(x, enc_prep)
    # dist.Normal(z_loc, z_scale).sample() via reparameterization in plain JAX.
    eps = jax.random.normal(key, z_loc.shape, jnp.float32)
    encode = z_loc + z_scale * eps
    return vae_decoder_classifier_forward(encode, dec_prep)


# ---------------------------------------------------------------------------
# parameter init (matches torch.nn.Linear default U(-1/sqrt(fan_in), +))
# ---------------------------------------------------------------------------
def init_params(key, in_channel, hidden_dim, z_dim, out_channel):
    ks = jax.random.split(key, 12)

    def linear(kw, kb, fan_in, fan_out):
        bound = 1.0 / math.sqrt(fan_in)
        w = jax.random.uniform(kw, (fan_in, fan_out), jnp.float32, -bound, bound)
        b = jax.random.uniform(kb, (fan_out,), jnp.float32, -bound, bound)
        return w, b

    w1, b1 = linear(ks[0], ks[1], in_channel, hidden_dim)
    w21, b21 = linear(ks[2], ks[3], hidden_dim, z_dim)
    w22, b22 = linear(ks[4], ks[5], hidden_dim, z_dim)
    wd1, bd1 = linear(ks[6], ks[7], z_dim, hidden_dim)
    # torch hardcodes the decoder output to 10240 (== default in_channel);
    # here it reconstructs the flattened input size of this small config.
    wd2, bd2 = linear(ks[8], ks[9], hidden_dim, in_channel)
    wc, bc = linear(ks[10], ks[11], z_dim, out_channel)
    return ((w1, b1, w21, b21, w22, b22), (wd1, bd1, wd2, bd2), (wc, bc))


# ---------------------------------------------------------------------------
# pure-JAX references (same bf16 matmul precision as the kernels)
# ---------------------------------------------------------------------------
def _bf16_linear(x, w, b):
    return jnp.dot(x.astype(jnp.bfloat16), w.astype(jnp.bfloat16),
                   preferred_element_type=jnp.float32) + b


def _encoder_ref(x, enc_params):
    w1, b1, w21, b21, w22, b22 = enc_params
    xf = x.reshape(x.shape[0], -1)
    h = jax.nn.softplus(_bf16_linear(xf, w1, b1))
    return _bf16_linear(h, w21, b21), jnp.exp(_bf16_linear(h, w22, b22))


def _decoder_classifier_ref(z, dec_params, cls_params):
    wd1, bd1, wd2, bd2 = dec_params
    wc, bc = cls_params
    h = jax.nn.softplus(_bf16_linear(z, wd1, bd1))
    return jax.nn.sigmoid(_bf16_linear(h, wd2, bd2)), _bf16_linear(z, wc, bc)


# ---------------------------------------------------------------------------
if __name__ == "__main__":
    # Small shapes consistent with the module (in_channel = C*H*W).
    B, C, H, W = 2, 4, 16, 16
    in_channel = C * H * W        # 1024 (stands in for the default 10240)
    hidden_dim = 256              # (stands in for the default 1024)
    z_dim = 128                   # (stands in for the default 256)
    out_channel = 2

    key = jax.random.PRNGKey(0)
    kx, kp, ksample = jax.random.split(key, 3)
    x = jax.random.normal(kx, (B, C, H, W), dtype=jnp.float32)
    params = init_params(kp, in_channel, hidden_dim, z_dim, out_channel)

    # One-time weight prep (bf16, head fusion, pads).  Small explicit tiles
    # here so the K / N streaming grids have multiple steps even at these
    # reduced shapes; default caps (2048) suit the torch defaults (10240).
    prepared = prepare_params(params, tile_k=256, tile_n=512)

    decode, class_output = vae_encoding_forward(x, prepared, ksample)
    jax.block_until_ready((decode, class_output))
    assert decode.shape == (B, in_channel)
    assert class_output.shape == (B, out_channel)

    # --- correctness checks against pure-JAX references -------------------
    enc_prep, dec_prep = prepared
    z_loc, z_scale = vae_encoder_forward(x, enc_prep)
    ref_loc, ref_scale = _encoder_ref(x, params[0])
    assert jnp.allclose(z_loc, ref_loc, atol=2e-2, rtol=2e-2)
    assert jnp.allclose(z_scale, ref_scale, atol=2e-2, rtol=2e-2)

    eps = jax.random.normal(ksample, z_loc.shape, jnp.float32)
    encode = z_loc + z_scale * eps
    ref_dec, ref_cls = _decoder_classifier_ref(encode, params[1], params[2])
    assert jnp.allclose(decode, ref_dec, atol=2e-2, rtol=2e-2)
    assert jnp.allclose(class_output, ref_cls, atol=2e-2, rtol=2e-2)

    print("KERNEL_OK")
</pallas_src>

<mosaic_0001>
module attributes {stable_mosaic.version = 11 : i64} {
  func.func @_probe(%arg0: i32, %arg1: memref<8x128xf32, #tpu.memory_space<vmem>>, %arg2: memref<8x128xf32, #tpu.memory_space<vmem>>) attributes {dimension_semantics = [#tpu.dimension_semantics<arbitrary>], iteration_bounds = array<i64: 1>, scalar_prefetch = 0 : i64, scratch_operands = 0 : i64, tpu.core_type = #tpu.core_type<tc>, window_params = [{pipeline_mode = #tpu.pipeline_mode<synchronous>, transform_indices = @transform_0, window_bounds = array<i64: 8, 128>}, {pipeline_mode = #tpu.pipeline_mode<synchronous>, transform_indices = @transform_1, window_bounds = array<i64: 8, 128>}]} {
    %c0 = arith.constant 0 : index
    %c0_0 = arith.constant 0 : index
    %0 = vector.load %arg1[%c0, %c0_0] : memref<8x128xf32, #tpu.memory_space<vmem>>, vector<8x128xf32>
    %cst = arith.constant 2.000000e+00 : f32
    %1 = vector.broadcast %cst : f32 to vector<8x128xf32>
    %2 = arith.mulf %0, %1 : vector<8x128xf32>
    %c0_1 = arith.constant 0 : index
    %c0_2 = arith.constant 0 : index
    %3 = vector.load %arg2[%c0_1, %c0_2] : memref<8x128xf32, #tpu.memory_space<vmem>>, vector<8x128xf32>
    tpu.vector_store %arg2[%c0_1, %c0_2], %2 {strides = array<i32>} : memref<8x128xf32, #tpu.memory_space<vmem>>, vector<8x128xf32>,
    return
  }
  func.func @transform_0(%arg0: i32) -> (i32, i32) {
    %c0_i32 = arith.constant 0 : i32
    %c0_i32_0 = arith.constant 0 : i32
    %c0_i32_1 = arith.constant 0 : i32
    return %c0_i32, %c0_i32_0 : i32, i32
  }
  func.func @transform_1(%arg0: i32) -> (i32, i32) {
    %c0_i32 = arith.constant 0 : i32
    %c0_i32_0 = arith.constant 0 : i32
    %c0_i32_1 = arith.constant 0 : i32
    return %c0_i32, %c0_i32_0 : i32, i32
  }
}

module attributes {stable_mosaic.version = 11 : i64} {
  func.func @_encoder_kernel(%arg0: i32, %arg1: i32, %arg2: memref<16x256xbf16, #tpu.memory_space<vmem>>, %arg3: memref<256x256xbf16, #tpu.memory_space<vmem>>, %arg4: memref<1x256xf32, #tpu.memory_space<vmem>>, %arg5: memref<256x256xbf16, #tpu.memory_space<vmem>>, %arg6: memref<1x256xf32, #tpu.memory_space<vmem>>, %arg7: memref<16x128xf32, #tpu.memory_space<vmem>>, %arg8: memref<16x128xf32, #tpu.memory_space<vmem>>, %arg9: memref<16x256xf32, #tpu.memory_space<vmem>>) attributes {dimension_semantics = [#tpu.dimension_semantics<parallel>, #tpu.dimension_semantics<arbitrary>], iteration_bounds = array<i64: 1, 4>, scalar_prefetch = 0 : i64, scratch_operands = 1 : i64, tpu.core_type = #tpu.core_type<tc>, window_params = [{transform_indices = @transform_0, window_bounds = array<i64: 16, 256>}, {transform_indices = @transform_1, window_bounds = array<i64: 256, 256>}, {pipeline_mode = #tpu.pipeline_mode<synchronous>, transform_indices = @transform_2, window_bounds = array<i64: 1, 256>}, {pipeline_mode = #tpu.pipeline_mode<synchronous>, transform_indices = @transform_3, window_bounds = array<i64: 256, 256>}, {pipeline_mode = #tpu.pipeline_mode<synchronous>, transform_indices = @transform_4, window_bounds = array<i64: 1, 256>}, {transform_indices = @transform_5, window_bounds = array<i64: 16, 128>}, {transform_indices = @transform_6, window_bounds = array<i64: 16, 128>}]} {
    %c0_i32 = arith.constant 0 : i32
    %0 = arith.cmpi eq, %arg1, %c0_i32 : i32
    %1 = arith.extui %0 : i1 to i32
    %c0_i32_0 = arith.constant 0 : i32
    %2 = arith.cmpi ne, %1, %c0_i32_0 : i32
    scf.if %2 {
      %cst_9 = arith.constant 0.000000e+00 : f32
      %12 = vector.broadcast %cst_9 : f32 to vector<16x256xf32>
      %c0_10 = arith.constant 0 : index
      %c0_11 = arith.constant 0 : index
      %13 = vector.load %arg9[%c0_10, %c0_11] : memref<16x256xf32, #tpu.memory_space<vmem>>, vector<16x256xf32>
      tpu.vector_store %arg9[%c0_10, %c0_11], %12 {strides = array<i32>} : memref<16x256xf32, #tpu.memory_space<vmem>>, vector<16x256xf32>,
    } else {
    }
    %c0 = arith.constant 0 : index
    %c0_1 = arith.constant 0 : index
    %3 = vector.load %arg9[%c0, %c0_1] : memref<16x256xf32, #tpu.memory_space<vmem>>, vector<16x256xf32>
    %c0_2 = arith.constant 0 : index
    %c0_3 = arith.constant 0 : index
    %4 = vector.load %arg2[%c0_2, %c0_3] : memref<16x256xbf16, #tpu.memory_space<vmem>>, vector<16x256xbf16>
    %c0_4 = arith.constant 0 : index
    %c0_5 = arith.constant 0 : index
    %5 = vector.load %arg3[%c0_4, %c0_5] : memref<256x256xbf16, #tpu.memory_space<vmem>>, vector<256x256xbf16>
    %cst = arith.constant dense<0.000000e+00> : vector<16x256xf32>
    %6 = tpu.matmul %4, %5, %cst {dimension_numbers = #tpu.dot_dimension_numbers<[1], [0], [0], [1], [0, 0, 1, 1], [], []>} : vector<16x256xbf16>, vector<256x256xbf16>, vector<16x256xf32> -> vector<16x256xf32>
    %7 = arith.addf %3, %6 : vector<16x256xf32>
    %c0_6 = arith.constant 0 : index
    %c0_7 = arith.constant 0 : index
    %8 = vector.load %arg9[%c0_6, %c0_7] : memref<16x256xf32, #tpu.memory_space<vmem>>, vector<16x256xf32>
    tpu.vector_store %arg9[%c0_6, %c0_7], %7 {strides = array<i32>} : memref<16x256xf32, #tpu.memory_space<vmem>>, vector<16x256xf32>,
    %c3_i32 = arith.constant 3 : i32
    %9 = arith.cmpi eq, %arg1, %c3_i32 : i32
    %10 = arith.extui %9 : i1 to i32
    %c0_i32_8 = arith.constant 0 : i32
    %11 = arith.cmpi ne, %10, %c0_i32_8 : i32
    scf.if %11 {
      %c0_9 = arith.constant 0 : index
      %c0_10 = arith.constant 0 : index
      %12 = vector.load %arg9[%c0_9, %c0_10] : memref<16x256xf32, #tpu.memory_space<vmem>>, vector<16x256xf32>
      %c0_11 = arith.constant 0 : index
      %c0_12 = arith.constant 0 : index
      %13 = vector.load %arg4[%c0_11, %c0_12] : memref<1x256xf32, #tpu.memory_space<vmem>>, vector<1x256xf32>
      %14 = vector.broadcast %13 : vector<1x256xf32> to vector<16x256xf32>
      %15 = arith.addf %12, %14 : vector<16x256xf32>
      %cst_13 = arith.constant 0.000000e+00 : f32
      %16 = vector.broadcast %cst_13 : f32 to vector<16x256xf32>
      %17 = arith.maximumf %15, %16 : vector<16x256xf32>
      %18 = math.absf %15 : vector<16x256xf32>
      %cst_14 = arith.constant 0.000000e+00 : f32
      %19 = vector.broadcast %cst_14 : f32 to vector<16x256xf32>
      %20 = arith.subf %19, %18 : vector<16x256xf32>
      %21 = math.exp %20 : vector<16x256xf32>
      %22 = math.log1p %21 : vector<16x256xf32>
      %23 = arith.addf %17, %22 : vector<16x256xf32>
      %24 = arith.truncf %23 : vector<16x256xf32> to vector<16x256xbf16>
      %c0_15 = arith.constant 0 : index
      %c0_16 = arith.constant 0 : index
      %25 = vector.load %arg5[%c0_15, %c0_16] : memref<256x256xbf16, #tpu.memory_space<vmem>>, vector<256x256xbf16>
      %cst_17 = arith.constant dense<0.000000e+00> : vector<16x256xf32>
      %26 = tpu.matmul %24, %25, %cst_17 {dimension_numbers = #tpu.dot_dimension_numbers<[1], [0], [0], [1], [0, 0, 1, 1], [], []>} : vector<16x256xbf16>, vector<256x256xbf16>, vector<16x256xf32> -> vector<16x256xf32>
      %c0_18 = arith.constant 0 : index
      %c0_19 = arith.constant 0 : index
      %27 = vector.load %arg6[%c0_18, %c0_19] : memref<1x256xf32, #tpu.memory_space<vmem>>, vector<1x256xf32>
      %28 = vector.broadcast %27 : vector<1x256xf32> to vector<16x256xf32>
      %29 = arith.addf %26, %28 : vector<16x256xf32>
      %30 = vector.extract_strided_slice %29 {offsets = [0, 0], sizes = [16, 128], strides = [1, 1]} : vector<16x256xf32> to vector<16x128xf32>
      %c0_20 = arith.constant 0 : index
      %c0_21 = arith.constant 0 : index
      %31 = vector.load %arg7[%c0_20, %c0_21] : memref<16x128xf32, #tpu.memory_space<vmem>>, vector<16x128xf32>
      tpu.vector_store %arg7[%c0_20, %c0_21], %30 {strides = array<i32>} : memref<16x128xf32, #tpu.memory_space<vmem>>, vector<16x128xf32>,
      %32 = vector.extract_strided_slice %29 {offsets = [0, 128], sizes = [16, 128], strides = [1, 1]} : vector<16x256xf32> to vector<16x128xf32>
      %33 = math.exp %32 : vector<16x128xf32>
      %c0_22 = arith.constant 0 : index
      %c0_23 = arith.constant 0 : index
      %34 = vector.load %arg8[%c0_22, %c0_23] : memref<16x128xf32, #tpu.memory_space<vmem>>, vector<16x128xf32>
      tpu.vector_store %arg8[%c0_22, %c0_23], %33 {strides = array<i32>} : memref<16x128xf32, #tpu.memory_space<vmem>>, vector<16x128xf32>,
    } else {
    }
    return
  }
  func.func @transform_0(%arg0: i32, %arg1: i32) -> (i32, i32) {
    %c0_i32 = arith.constant 0 : i32
    return %arg0, %arg1 : i32, i32
  }
  func.func @transform_1(%arg0: i32, %arg1: i32) -> (i32, i32) {
    %c0_i32 = arith.constant 0 : i32
    %c0_i32_0 = arith.constant 0 : i32
    return %arg1, %c0_i32 : i32, i32
  }
  func.func @transform_2(%arg0: i32, %arg1: i32) -> (i32, i32) {
    %c0_i32 = arith.constant 0 : i32
    %c0_i32_0 = arith.constant 0 : i32
    %c0_i32_1 = arith.constant 0 : i32
    return %c0_i32, %c0_i32_0 : i32, i32
  }
  func.func @transform_3(%arg0: i32, %arg1: i32) -> (i32, i32) {
    %c0_i32 = arith.constant 0 : i32
    %c0_i32_0 = arith.constant 0 : i32
    %c0_i32_1 = arith.constant 0 : i32
    return %c0_i32, %c0_i32_0 : i32, i32
  }
  func.func @transform_4(%arg0: i32, %arg1: i32) -> (i32, i32) {
    %c0_i32 = arith.constant 0 : i32
    %c0_i32_0 = arith.constant 0 : i32
    %c0_i32_1 = arith.constant 0 : i32
    return %c0_i32, %c0_i32_0 : i32, i32
  }
  func.func @transform_5(%arg0: i32, %arg1: i32) -> (i32, i32) {
    %c0_i32 = arith.constant 0 : i32
    %c0_i32_0 = arith.constant 0 : i32
    return %arg0, %c0_i32 : i32, i32
  }
  func.func @transform_6(%arg0: i32, %arg1: i32) -> (i32, i32) {
    %c0_i32 = arith.constant 0 : i32
    %c0_i32_0 = arith.constant 0 : i32
    return %arg0, %c0_i32 : i32, i32
  }
}

</mosaic_0001>

<bundles_post_ra>
// kernel: tpu_custom_call.1
= control target key start
LH: loop header
LB: loop body
LE: loop exit
PB: predicated region body
PF: predicated region fallthrough
CT: control target
= control target key end

     0   :  { %6 = vsyncpa [#allocation3], 0  ;;  %s125_s0 = inlined_call_operand.hbm [shape: f32[8,128], index: 0, kind: input, shape index: {}]   ;;  %s126_s1 = inlined_call_operand.hbm [shape: f32[8,128], index: 1, kind: output, shape index: {}]  }
   0x1   :  { %7 = vsyncpa [#allocation4], 0  ;;  %s89_s6 = smov [#allocation2]   ;;  %s41_s10 = scalar_lea.hbm %s125_s0, 128 }
   0x2   :  { %s14_s7 = sshll.u32 %s89_s6, 4  ;;  %p42_p0 = scmp.ne.s32.totalorder %s125_s0, %s41_s10  ;;  %s15_s7 = int_to_ptr.vmem [resolvable:$true] %s14_s7 }
   0x3   :  { %p45_p1 = scmp.lt.u32.totalorder %s41_s10, %s125_s0 }
   0x5   :  { %p47_p2 = pnand %p45_p1, %p42_p0 }
   0x7   :  { %50 = shalt.err (!%p47_p2)
}
   0x8   :  { %s51_s15 = scalar_lea.vmem %s15_s7, 128  ;;  %p56_p4 = scmp.lt.s32.totalorder %s15_s7, %s15_s7 }
   0x9   :  { %p52_p3 = scmp.ne.s32.totalorder %s15_s7, %s51_s15  ;;  %p57_p5 = scmp.lt.s32.totalorder %s51_s15, %s51_s15 }
   0xb   :  { %p58_p6 = por %p57_p5, %p56_p4 }
   0xd   :  { %p59_p7 = pnand %p58_p6, %p52_p3 }
   0xf   :  { %62 = shalt.err (!%p59_p7)
}
  0x10   :  { %17 = dma.hbm_to_vmem [thread:$0]  %s125_s0, 128, %s15_s7, [#allocation3]  }
  0x11   :  { %85 = dma.done.wait [#allocation3], 128  }
  0x12   :  { %86 = vsyncadd [#allocation3], 4294967168  ;;  %s90_s18 = smov [#allocation5]   ;;  %v21_v0 = vld [vmem:[#allocation2] sm:$0xff] }
  0x13   :  { %s30_s19 = sshll.u32 %s90_s18, 4  ;;  %v22_v1 = vmul.f32 2.0, %v21_v0  ;;  %s31_s19 = int_to_ptr.vmem [resolvable:$true] %s30_s19 }
  0x14   :  { %s63_s20 = scalar_lea.vmem %s31_s19, 128  ;;  %p68_p9 = scmp.lt.s32.totalorder %s31_s19, %s31_s19 }
  0x15   :  { %23 = vst [vmem:[#allocation5] sm:$0xff] %v22_v1  ;;  %p64_p8 = scmp.ne.s32.totalorder %s31_s19, %s63_s20  ;;  %p69_p10 = scmp.lt.s32.totalorder %s63_s20, %s63_s20 }
  0x17   :  { %p70_p11 = por %p69_p10, %p68_p9 }
  0x19   :  { %p71_p12 = pnand %p70_p11, %p64_p8 }
  0x1b   :  { %74 = shalt.err (!%p71_p12)
}
  0x1c   :  { %s75_s23 = scalar_lea.hbm %s126_s1, 128 }
  0x1d   :  { %p76_p13 = scmp.ne.s32.totalorder %s126_s1, %s75_s23  ;;  %p79_p0 = scmp.lt.u32.totalorder %s75_s23, %s126_s1 }
  0x1f   :  { %p81_p1 = pnand %p79_p0, %p76_p13 }
  0x21   :  { %84 = shalt.err (!%p81_p1)
}
  0x22   :  { %33 = dma.vmem_to_hbm [thread:$0]  %s31_s19, 128, %s126_s1, [#allocation4]  }
  0x23   :  { %87 = dma.done.wait [#allocation4], 128  }
  0x24   :  { %88 = vsyncadd [#allocation4], 4294967168 }
  0x25   :  { %37 = vsyncpa [#allocation3], 1 }
  0x26   :  { %38 = vsyncpa [#allocation4], 1 }

// kernel: tpu_custom_call.1
= control target key start
LH: loop header
LB: loop body
LE: loop exit
PB: predicated region body
PF: predicated region fallthrough
CT: control target
= control target key end

     0   :  { %s1984_s0 = inlined_call_operand.hbm [shape: bf16[16,1024], index: 0, kind: input, shape index: {}]   ;;  %s1985_s1 = inlined_call_operand.hbm [shape: bf16[1024,256], index: 1, kind: input, shape index: {}]   ;;  %s1986_s2 = inlined_call_operand.vmem [shape: f32[1,256], index: 2, kind: input, shape index: {}]   ;;  %s1987_s3 = inlined_call_operand.hbm [shape: bf16[256,256], index: 3, kind: input, shape index: {}]   ;;  %s1988_s4 = inlined_call_operand.vmem [shape: f32[1,256], index: 4, kind: input, shape index: {}]   ;;  %s1989_s5 = inlined_call_operand.hbm [shape: f32[16,128], index: 5, kind: output, shape index: {0}]   ;;  %s1990_s6 = inlined_call_operand.hbm [shape: f32[16,128], index: 6, kind: output, shape index: {1}]  }
   0x1   :  { %2000 = sst [smem:[#allocation19_spill]] %s1984_s0 }
   0x2   :  { %2001 = sst [smem:[#allocation20_spill]] %s1987_s3 }
   0x3   :  { %12 = vsyncpa [#allocation4], 0 }
   0x4   :  { %14 = vsyncpa [#allocation4 + $0x1], 0 }
   0x5   :  { %15 = vsyncpa [#allocation7], 0 }
   0x6   :  { %17 = vsyncpa [#allocation7 + $0x1], 0 }
   0x7   :  { %18 = vsyncpa [#allocation5], 0 }
   0x8   :  { %19 = vsyncpa [#allocation11], 0  ;;  %s1645_s21 = smov 0   ;;  %s1647_s22 = smov 0  }
   0x9   :  { %s1649_s23 = smov 0   ;;  %s1651_s24 = smov 0  }
   0xa   :  { %s1653_s25 = smov 0   ;;  %s1655_s26 = smov 0  }
   0xb LB: > { %s1674_s27 = sadd.s32 4294967295, %s1597_s26   ;;  %s46_s28 = sadd.s32 1, %s1585_s23  ;;  %s1597_s26 = sphi %s1655_s26, %s25_s26   ;;  %s1593_s25 = sphi %s1653_s25, %s2028_s25   ;;  %s1589_s24 = sphi %s1651_s24, %s2027_s24   ;;  %s1585_s23 = sphi %s1649_s23, %s2026_s23   ;;  %s1581_s22 = sphi %s1647_s22, %s2025_s22   ;;  %s1577_s21 = sphi %s1645_s21, %s2024_s21  }
   0xc   : > { %p53_p0 = scmp.ne.s32.totalorder %s1585_s23, %s1581_s22  ;;  %p54_p1 = scmp.eq.s32.totalorder %s1597_s26, 0 }
   0xd   : > { %p59_p2 = scmp.ne.s32.totalorder %s1581_s22, %s1577_s21  ;;  %p1991_p3 = scmp.eq.s32.totalorder %s1674_s27, 0 }
   0xe   : > { %p55_p4 = por %p54_p1, %p53_p0  ;;  %p1090_p5 = scmp.ge.s32.totalorder %s1597_s26, 1 }
   0xf   : > { %p1685_p6 = por %p1991_p3, %p59_p2  ;;  %p211_p7 = scmp.lt.s32.totalorder %s1597_s26, 5 }
  0x10   : > { %s1599_s7 = smov [#allocation8]   ;;  %p1209_p10 = scmp.lt.s32.totalorder %s1597_s26, 4 }
  0x11   : > { %s2002_s29 = scalar_select %p1685_p6, 1, 0 }
  0x12   : > { %p1690_p8 = pnand %p1090_p5, %p211_p7  ;;  %s226_s8 = sshll.u32 %s1599_s7, 4  ;;  %s227_s8 = int_to_ptr.vmem [resolvable:$true] %s226_s8 }
  0x13   : > { %p1703_p12 = pnand %p1209_p10, %p55_p4  ;;  %s34_s11 = sadd.s32 1, %s1593_s25 }
  0x14   : > { %s2003_s30 = scalar_select %p1690_p8, 1, 0 }
  0x15   : > { %p1197_p9 = pneg %p1690_p8  ;;  %s2006_s3 = sld [smem:[#allocation20_spill]] }
  0x16   : > { %s2005_s10 = scalar_select %p1703_p12, 1, 0 }
  0x17   : > { %p1699_p11 = pnand %p1197_p9, %p1991_p3 }
  0x19   : > { %p1393_p0 = pneg %p1699_p11 }
  0x1b   : > { %s1391_s14 = scalar_lea.hbm %s2006_s3, 4096 }
  0x1c   : > { %p1392_p13 = scmp.ne.s32.totalorder %s2006_s3, %s1391_s14  ;;  %p1398_p4 = scmp.lt.u32.totalorder %s1391_s14, %s2006_s3 }
  0x1e   : > { %p1394_p1 = pnand %p1393_p0, %p1392_p13 }
  0x20   : > { %p1395_p2 = pneg %p1394_p1 }
  0x22   : > { %p1400_p5 = pnand %p1398_p4, %p1395_p2 }
  0x24   : > { %1403 = shalt.err (!%p1400_p5)
}
  0x25   : > { %s1404_s19 = scalar_lea.vmem %s227_s8, 4096  ;;  %p1412_p3 = scmp.lt.s32.totalorder %s227_s8, %s227_s8 }
  0x26   : > { %p1405_p7 = scmp.ne.s32.totalorder %s227_s8, %s1404_s19  ;;  %p1413_p6 = scmp.lt.s32.totalorder %s1404_s19, %s1404_s19 }
  0x28   : > { %p1407_p9 = pnand %p1405_p7, %p1393_p0  ;;  %p1414_p8 = por %p1413_p6, %p1412_p3 }
  0x2a   : > { %p1408_p10 = pneg %p1407_p9 }
  0x2c   : > { %p1415_p12 = pnand %p1414_p8, %p1408_p10 }
  0x2e   : > { %1418 = shalt.err (!%p1415_p12)
}
  0x2f   : > { %s1995_s20 = smov 128   ;;  %s1997_s21 = smov 8  }
  0x30   : > { %1200 = dma.hbm_to_vmem [thread:$0]  (!%p1699_p11), %s2006_s3, 4096, %s227_s8, [#allocation7], %s1995_s20, %s1995_s20, %s1997_s21  }
  0x31   : > { %p35_p3 = scmp.ge.s32.totalorder %s34_s11, 4  ;;  %s1728_s13 = sand.u32 1, %s1585_s23  }
  0x32   : > { %s1178_s14 = sshll.u32 %s1593_s25, 7  ;;  %s1093_s15 = sshll.u32 %s1728_s13, 4 }
  0x33   : > { %s2030_s11 = smov (%p35_p3, %s34_s11), 0  ;;  %s2008_s0 = sld [smem:[#allocation19_spill]] }
  0x34   : > { %2007 = sst [smem:[#allocation17_spill]] %s2030_s11  ;;  %s42_s9 = ssub.s32 %s1593_s25, %s2030_s11 }
  0x35   : > { %p44_p6 = scmp.eq.s32.totalorder %s42_s9, 0  ;;  %s247_s8 = scalar_lea.vmem [#allocation3], %s1093_s15 }
  0x36   : > { %s257_s19 = sshll.u32 %s247_s8, 4  ;;  %s244_s20 = scalar_lea.sflag [#allocation4], %s1728_s13  ;;  %s1746_s19 = int_to_ptr.vmem [resolvable:$true] %s257_s19 }
  0x37   : > { %s1744_s7 = scalar_select %p44_p6, %s1585_s23, %s46_s28  }
  0x38   : > { %p2010_p11 = scmp.ne.s32.totalorder %s2005_s10, 0 }
  0x39   : > { %s1739_s18 = scalar_lea.hbm %s2008_s0, %s1178_s14  ;;  %2009 = sst [smem:[#allocation18_spill]] %s1744_s7 }
  0x3a   : > { %s1419_s21 = scalar_lea.hbm %s1739_s18, 256  ;;  %p1421_p12 = pneg %p2010_p11 }
  0x3b   : > { %p1420_p8 = scmp.ne.s32.totalorder %s1739_s18, %s1419_s21  ;;  %s1424_s15 = scalar_lea.hbm %s2008_s0, 1024 }
  0x3c   : > { %p1425_p1 = scmp.lt.u32.totalorder %s1739_s18, %s2008_s0  ;;  %p1426_p2 = scmp.lt.u32.totalorder %s1424_s15, %s1419_s21 }
  0x3d   : > { %p1422_p13 = pnand %p1421_p12, %p1420_p8  ;;  %p1428_p5 = scmp.lt.u32.totalorder %s1419_s21, %s1739_s18 }
  0x3e   : > { %p1427_p4 = por %p1426_p2, %p1425_p1 }
  0x3f   : > { %p1423_p0 = pneg %p1422_p13 }
  0x40   : > { %p1429_p7 = por %p1428_p5, %p1427_p4 }
  0x42   : > { %p1430_p9 = pnand %p1429_p7, %p1423_p0 }
  0x44   : > { %1433 = shalt.err (!%p1430_p9)
}
  0x45   : > { %s1434_s28 = scalar_lea.vmem %s1746_s19, 256  ;;  %s1602_s8 = smov [#allocation3]  }
  0x46   : > { %p1435_p10 = scmp.ne.s32.totalorder %s1746_s19, %s1434_s28  ;;  %s1439_s14 = sshll.u32 %s1602_s8, 4  ;;  %s1440_s14 = int_to_ptr.vmem [resolvable:$false] %s1439_s14 }
  0x47   : > { %s1441_s9 = scalar_lea.vmem %s1440_s14, 512  ;;  %p1442_p8 = scmp.lt.s32.totalorder %s1746_s19, %s1440_s14 }
  0x48   : > { %p1437_p3 = pnand %p1435_p10, %p1421_p12  ;;  %p1443_p13 = scmp.lt.s32.totalorder %s1441_s9, %s1434_s28 }
  0x4a   : > { %p1438_p6 = pneg %p1437_p3  ;;  %p1444_p1 = por %p1443_p13, %p1442_p8 }
  0x4c   : > { %p1445_p2 = pnand %p1444_p1, %p1438_p6 }
  0x4e   : > { %1448 = shalt.err (!%p1445_p2)
}
  0x4f   : > { %s1603_s21 = smov 512   ;;  %s2011_s15 = smov 8  }
  0x50   : > { %s2012_s16 = smov 128   ;;  %s1096_s17 = sshll.u32 %s1728_s13, 8 }
  0x51   : > { %1204 = dma.hbm_to_vmem [thread:$0]  (!%p2010_p11), %s1739_s18, 256, %s1746_s19, %s244_s20, %s1603_s21, %s2012_s16, %s2011_s15  }
  0x52   : > { %s1180_s8 = sshll.u32 %s1593_s25, 12  ;;  %s271_s12 = scalar_lea.vmem [#allocation6], %s1096_s17 }
  0x53   : > { %s1784_s9 = scalar_lea.hbm %s1985_s1, %s1180_s8  ;;  %s279_s0 = sshll.u32 %s271_s12, 4  ;;  %s1786_s0 = int_to_ptr.vmem [resolvable:$true] %s279_s0 }
  0x54   : > { %s2013_s3 = sand.u32 1, %s1597_s26   ;;  %s1449_s7 = scalar_lea.hbm %s1784_s9, 4096 }
  0x55   : > { %s1790_s11 = scalar_lea.sflag [#allocation7], %s2013_s3  ;;  %p1450_p0 = scmp.ne.s32.totalorder %s1784_s9, %s1449_s7 }
  0x56   : > { %s1454_s18 = scalar_lea.hbm %s1985_s1, 16384  ;;  %p1455_p7 = scmp.lt.u32.totalorder %s1784_s9, %s1985_s1 }
  0x57   : > { %p1452_p4 = pnand %p1450_p0, %p1421_p12  ;;  %p1456_p9 = scmp.lt.u32.totalorder %s1454_s18, %s1449_s7 }
  0x58   : > { %p1458_p3 = scmp.lt.u32.totalorder %s1449_s7, %s1784_s9 }
  0x59   : > { %p1453_p5 = pneg %p1452_p4  ;;  %p1457_p10 = por %p1456_p9, %p1455_p7 }
  0x5b   : > { %p1459_p6 = por %p1458_p3, %p1457_p10 }
  0x5d   : > { %p1460_p8 = pnand %p1459_p6, %p1453_p5 }
  0x5f   : > { %1463 = shalt.err (!%p1460_p8)
}
  0x60   : > { %s1464_s3 = scalar_lea.vmem %s1786_s0, 4096  ;;  %s1604_s12 = smov [#allocation6]  }
  0x61   : > { %p1465_p13 = scmp.ne.s32.totalorder %s1786_s0, %s1464_s3  ;;  %s1469_s17 = sshll.u32 %s1604_s12, 4  ;;  %s1470_s17 = int_to_ptr.vmem [resolvable:$false] %s1469_s17 }
  0x62   : > { %s1471_s8 = scalar_lea.vmem %s1470_s17, 8192  ;;  %p1472_p0 = scmp.lt.s32.totalorder %s1786_s0, %s1470_s17 }
  0x63   : > { %p1467_p1 = pnand %p1465_p13, %p1421_p12  ;;  %p1473_p4 = scmp.lt.s32.totalorder %s1471_s8, %s1464_s3 }
  0x65   : > { %p1468_p2 = pneg %p1467_p1  ;;  %p1474_p7 = por %p1473_p4, %p1472_p0 }
  0x67   : > { %p1475_p9 = pnand %p1474_p7, %p1468_p2 }
  0x69   : > { %1478 = shalt.err (!%p1475_p9)
}
  0x6a   : > { %1207 = dma.hbm_to_vmem [thread:$0]  (!%p2010_p11), %s1784_s9, 4096, %s1786_s0, %s1790_s11, %s2012_s16, %s2012_s16, %s2011_s15  }
  0x6b   : > { %p2014_p12 = scmp.ne.s32.totalorder %s2003_s30, 0 }
  0x6c   : > { %s293_s7 = sand.u32 (!%p2014_p12), 1, %s1581_s22   ;;  %p2015_p5 = scmp.ne.s32.totalorder (!%p2014_p12), %s2002_s29, 0 }
  0x6d   : > { %291 = sbr.rel (%p2014_p12) target bundleno = 745 (0x2e9), region = 40  ;;  %s1101_s28 = sshll.u32 (!%p2014_p12), %s293_s7, 4 }
  0x6e   : > { %s294_s14 = scalar_lea.sflag (!%p2014_p12), [#allocation4], %s293_s7  ;;  %s1822_s20 = scalar_lea.vmem (!%p2014_p12), [#allocation3], %s1101_s28 }
  0x74   : > { %1556 = dma.done.wait (%p2015_p5), %s294_s14, 256  }
  0x75   : > { %1558 = vsyncadd (%p2015_p5), %s294_s14, 4294967040  ;;  %s302_s10 = sand.u32 1, %s1674_s27   ;;  %s1102_s13 = sshll.u32 %s293_s7, 8 }
  0x76   : > { %s303_s0 = scalar_lea.sflag [#allocation7], %s302_s10  ;;  %s1829_s11 = scalar_lea.vmem [#allocation6], %s1102_s13 }
  0x77   : > { %1560 = dma.done.wait (%p2015_p5), %s303_s0, 4096  }
  0x78   : > { %1562 = vsyncadd (%p2015_p5), %s303_s0, 4294963200  ;;  %p2016_p11 = scmp.eq.s32.totalorder %s1674_s27, 0 }
  0x7a   : > { %1564 = dma.done.wait (%p2016_p11), [#allocation7], 4096   ;;  %p2017_p10 = pmov %p2016_p11 }
  0x7b   : > { %p1104_p3 = scmp.ne.s32.totalorder %s1589_s24, 0 }
  0x7c   : > { %1566 = vsyncadd (%p2017_p10), [#allocation7], 4294963200  ;;  %v1605_v0 = vmov (!%p1104_p3), 0.0  }
  0x7d   : > { %347 = sbr.rel (%p1104_p3) target bundleno = 132 (0x84), region = 56  ;;  %348 = vst [vmem:[#allocation2] sm:$0xff] (!%p1104_p3), %v1605_v0  ;;  %349 = vst [vmem:[#allocation2 + $0x8] sm:$0xff] (!%p1104_p3), %v1605_v0 }
  0x7e   : > { %350 = vst [vmem:[#allocation2 + $0x10] sm:$0xff] (!%p1104_p3), %v1605_v0  ;;  %351 = vst [vmem:[#allocation2 + $0x18] sm:$0xff] (!%p1104_p3), %v1605_v0 }
  0x84 PF: > { %v1272_v1 = vld [vmem:[%s1829_s11 + $0x4] ss:$8 sps:$4 sm:$0xff]   ;;  %v1274_v2 = vld [vmem:[%s1829_s11] ss:$8 sps:$4 sm:$0xff]   ;;  %v1275_v3 = vld [vmem:[%s1829_s11 + $0x14] ss:$8 sps:$4 sm:$0xff]  }
  0x85   : > { %560 = vmatprep.subr.bf16.mxu0 %v1272_v1  ;;  %v1277_v4 = vld [vmem:[%s1829_s11 + $0x10] ss:$8 sps:$4 sm:$0xff]   ;;  %v1278_v5 = vld [vmem:[%s1829_s11 + $0x24] ss:$8 sps:$4 sm:$0xff]   ;;  %v1280_v6 = vld [vmem:[%s1829_s11 + $0x20] ss:$8 sps:$4 sm:$0xff]  }
  0x86   : > { %561 = vmatpush1.bf16.msra.mxu0 %v1274_v2  ;;  %v1281_v7 = vld [vmem:[%s1829_s11 + $0x34] ss:$8 sps:$4 sm:$0xff]   ;;  %v1283_v8 = vld [vmem:[%s1829_s11 + $0x30] ss:$8 sps:$4 sm:$0xff]   ;;  %v1284_v9 = vld [vmem:[%s1829_s11 + $0x44] ss:$8 sps:$4 sm:$0xff]  }
  0x87   : > { %562 = vmatprep.subr.bf16.mxu0 %v1275_v3  ;;  %v1286_v10 = vld [vmem:[%s1829_s11 + $0x40] ss:$8 sps:$4 sm:$0xff]   ;;  %v1287_v11 = vld [vmem:[%s1829_s11 + $0x54] ss:$8 sps:$4 sm:$0xff]   ;;  %v1289_v12 = vld [vmem:[%s1829_s11 + $0x50] ss:$8 sps:$4 sm:$0xff]  }
  0x88   : > { %v1290_v13 = vld [vmem:[%s1829_s11 + $0x64] ss:$8 sps:$4 sm:$0xff]   ;;  %v1292_v15 = vld [vmem:[%s1829_s11 + $0x60] ss:$8 sps:$4 sm:$0xff]   ;;  %v1293_v16 = vld [vmem:[%s1829_s11 + $0x74] ss:$8 sps:$4 sm:$0xff]  }
  0x89   : > { %v1322_v14 = vld [vmem:[%s1822_s20 + $0x4] ss:$8 sps:$4 sm:$0xff]   ;;  %v1295_v17 = vld [vmem:[%s1829_s11 + $0x70] ss:$8 sps:$4 sm:$0xff]   ;;  %v1298_v19 = vld [vmem:[%s1829_s11 + $0x80] ss:$8 sps:$4 sm:$0xff]  }
  0x8a   : > { %563 = vmatpush1.bf16.msra.mxu0 %v1277_v4  ;;  %592 = vmatprep.mubr.bf16.mxu0 %v1322_v14  ;;  %v1296_v18 = vld [vmem:[%s1829_s11 + $0x84] ss:$8 sps:$4 sm:$0xff]   ;;  %v1299_v20 = vld [vmem:[%s1829_s11 + $0x94] ss:$8 sps:$4 sm:$0xff]   ;;  %v1301_v21 = vld [vmem:[%s1829_s11 + $0x90] ss:$8 sps:$4 sm:$0xff]  }
  0x8b   : > { %564 = vmatprep.subr.bf16.mxu0 %v1278_v5  ;;  %v1302_v22 = vld [vmem:[%s1829_s11 + $0xa4] ss:$8 sps:$4 sm:$0xff]   ;;  %v1304_v23 = vld [vmem:[%s1829_s11 + $0xa0] ss:$8 sps:$4 sm:$0xff]   ;;  %v1305_v24 = vld [vmem:[%s1829_s11 + $0xb4] ss:$8 sps:$4 sm:$0xff]  }
  0x8c   : > { %v1307_v25 = vld [vmem:[%s1829_s11 + $0xb0] ss:$8 sps:$4 sm:$0xff]   ;;  %v1308_v26 = vld [vmem:[%s1829_s11 + $0xc4] ss:$8 sps:$4 sm:$0xff]   ;;  %v1310_v27 = vld [vmem:[%s1829_s11 + $0xc0] ss:$8 sps:$4 sm:$0xff]  }
  0x8d   : > { %v1311_v28 = vld [vmem:[%s1829_s11 + $0xd4] ss:$8 sps:$4 sm:$0xff]   ;;  %v1313_v29 = vld [vmem:[%s1829_s11 + $0xd0] ss:$8 sps:$4 sm:$0xff]   ;;  %v1314_v30 = vld [vmem:[%s1829_s11 + $0xe4] ss:$8 sps:$4 sm:$0xff]  }
  0x8e   : > { %565 = vmatpush1.bf16.msra.mxu0 %v1280_v6  ;;  %v1316_v31 = vld [vmem:[%s1829_s11 + $0xe0] ss:$8 sps:$4 sm:$0xff]   ;;  %v1317_v32 = vld [vmem:[%s1829_s11 + $0xf4] ss:$8 sps:$4 sm:$0xff]   ;;  %v1319_v33 = vld [vmem:[%s1829_s11 + $0xf0] ss:$8 sps:$4 sm:$0xff]  }
  0x8f   : > { %566 = vmatprep.subr.bf16.mxu0 %v1281_v7  ;;  %v1320_v34 = vld [vmem:[%s1822_s20] ss:$8 sps:$4 sm:$0xff]   ;;  %p1139_p6 = scmp.ne.s32.totalorder %s1589_s24, 3 }
  0x90   : > { %v352_v35 = vld [vmem:[#allocation2] sm:$0xff]  ;;  %v353_v36 = vld [vmem:[#allocation2 + $0x8] sm:$0xff]  ;;  %v354_v38 = vld [vmem:[#allocation2 + $0x10] sm:$0xff]  ;;  %v621_v55 = vlaneseq (!%p1139_p6) }
  0x91   : > { %v355_v41 = vld [vmem:[#allocation2 + $0x18] sm:$0xff]  ;;  %v1323_v47 = vld [vmem:[#allocation8 + $0x4] ss:$8 sps:$4 sm:$0xff] (!%p1139_p6)   ;;  %v1325_v48 = vld [vmem:[#allocation8] ss:$8 sps:$4 sm:$0xff] (!%p1139_p6)  }
  0x92   : > { %567 = vmatpush1.bf16.msra.mxu0 %v1283_v8  ;;  %v1326_v49 = vld [vmem:[#allocation8 + $0x14] ss:$8 sps:$4 sm:$0xff] (!%p1139_p6)   ;;  %v1328_v50 = vld [vmem:[#allocation8 + $0x10] ss:$8 sps:$4 sm:$0xff] (!%p1139_p6)   ;;  %v1329_v51 = vld [vmem:[#allocation8 + $0x24] ss:$8 sps:$4 sm:$0xff] (!%p1139_p6)  }
  0x93   : > { %568 = vmatprep.subr.bf16.mxu0 %v1284_v9  ;;  %v1331_v52 = vld [vmem:[#allocation8 + $0x20] ss:$8 sps:$4 sm:$0xff] (!%p1139_p6)   ;;  %v1332_v53 = vld [vmem:[#allocation8 + $0x34] ss:$8 sps:$4 sm:$0xff] (!%p1139_p6)   ;;  %v1334_v54 = vld [vmem:[#allocation8 + $0x30] ss:$8 sps:$4 sm:$0xff] (!%p1139_p6)  }
  0x94   : > { %v1335_v56 = vld [vmem:[#allocation8 + $0x44] ss:$8 sps:$4 sm:$0xff] (!%p1139_p6)   ;;  %v1337_v57 = vld [vmem:[#allocation8 + $0x40] ss:$8 sps:$4 sm:$0xff] (!%p1139_p6)   ;;  %v1875_v58 = vshrl.u32 (!%p1139_p6), %v621_v55, 7 }
  0x95   : > { %v1338_v59 = vld [vmem:[#allocation8 + $0x54] ss:$8 sps:$4 sm:$0xff] (!%p1139_p6)   ;;  %v1340_v60 = vld [vmem:[#allocation8 + $0x50] ss:$8 sps:$4 sm:$0xff] (!%p1139_p6)   ;;  %v1341_v63 = vld [vmem:[#allocation8 + $0x64] ss:$8 sps:$4 sm:$0xff] (!%p1139_p6)  }
  0x96   : > { %569 = vmatpush1.bf16.msra.mxu0 %v1286_v10  ;;  %v623_v61 = vsub.s32 (!%p1139_p6), 0, %v1875_v58  ;;  %v627_v62 = vsub.s32 (!%p1139_p6), 1, %v1875_v58  ;;  %v619_v2 = vld [vmem:[%s1986_s2] sm:$0x3] (!%p1139_p6)  ;;  %v1344_v8 = vld [vmem:[#allocation8 + $0x74] ss:$8 sps:$4 sm:$0xff] (!%p1139_p6)  }
  0x97   : > { %570 = vmatprep.subr.bf16.mxu0 %v1287_v11  ;;  %v1343_v5 = vld [vmem:[#allocation8 + $0x60] ss:$8 sps:$4 sm:$0xff] (!%p1139_p6)  }
  0x98   : > { %v624_v6 = vrot.slane (!%p1139_p6), %v619_v2, %v623_v61  ;;  %v628_v7 = vrot.slane (!%p1139_p6), %v619_v2, %v627_v62 }
  0x9a   : > { %571 = vmatpush1.bf16.msra.mxu0 %v1289_v12 }
  0x9b   : > { %572 = vmatprep.subr.bf16.mxu0 %v1290_v13  ;;  %v1346_v13 = vld [vmem:[#allocation8 + $0x70] ss:$8 sps:$4 sm:$0xff] (!%p1139_p6)  }
  0x9e   : > { %573 = vmatpush1.bf16.msra.mxu0 %v1292_v15 }
  0x9f   : > { %574 = vmatprep.subr.bf16.mxu0 %v1293_v16  ;;  %v1347_v16 = vld [vmem:[#allocation8 + $0x84] ss:$8 sps:$4 sm:$0xff] (!%p1139_p6)  }
  0xa2   : > { %575 = vmatpush1.bf16.msra.mxu0 %v1295_v17 }
  0xa3   : > { %576 = vmatprep.subr.bf16.mxu0 %v1296_v18 }
  0xa6   : > { %577 = vmatpush1.bf16.msra.mxu0 %v1298_v19 }
  0xa7   : > { %578 = vmatprep.subr.bf16.mxu0 %v1299_v20 }
  0xaa   : > { %579 = vmatpush1.bf16.msra.mxu0 %v1301_v21 }
  0xab   : > { %580 = vmatprep.subr.bf16.mxu0 %v1302_v22 }
  0xae   : > { %581 = vmatpush1.bf16.msra.mxu0 %v1304_v23  ;;  %v1349_v23 = vld [vmem:[#allocation8 + $0x80] ss:$8 sps:$4 sm:$0xff] (!%p1139_p6)  }
  0xaf   : > { %582 = vmatprep.subr.bf16.mxu0 %v1305_v24 }
  0xb2   : > { %583 = vmatpush1.bf16.msra.mxu0 %v1307_v25 }
  0xb3   : > { %584 = vmatprep.subr.bf16.mxu0 %v1308_v26  ;;  %v1350_v26 = vld [vmem:[#allocation8 + $0x94] ss:$8 sps:$4 sm:$0xff] (!%p1139_p6)  }
  0xb6   : > { %585 = vmatpush1.bf16.msra.mxu0 %v1310_v27 }
  0xb7   : > { %586 = vmatprep.subr.bf16.mxu0 %v1311_v28 }
  0xba   : > { %587 = vmatpush1.bf16.msra.mxu0 %v1313_v29  ;;  %v1352_v29 = vld [vmem:[#allocation8 + $0x90] ss:$8 sps:$4 sm:$0xff] (!%p1139_p6)  }
  0xbb   : > { %588 = vmatprep.subr.bf16.mxu0 %v1314_v30  ;;  %v1353_v30 = vld [vmem:[#allocation8 + $0xa4] ss:$8 sps:$4 sm:$0xff] (!%p1139_p6)  }
  0xbe   : > { %589 = vmatpush1.bf16.msra.mxu0 %v1316_v31  ;;  %v1355_v31 = vld [vmem:[#allocation8 + $0xa0] ss:$8 sps:$4 sm:$0xff] (!%p1139_p6)  }
  0xbf   : > { %590 = vmatprep.subr.bf16.mxu0 %v1317_v32  ;;  %v1356_v32 = vld [vmem:[#allocation8 + $0xb4] ss:$8 sps:$4 sm:$0xff] (!%p1139_p6)  }
  0xc2   : > { %591 = vmatpush1.bf16.msra.mxu0 %v1319_v33 }
  0xc3   : > { %901 = vmatprep.subr.bf16.mxu0 (!%p1139_p6), %v1323_v47 }
  0xc5   : > { %593 = vmatmul.mubr.bf16.vlgmr.msra.gmra.mrb[0].mxu0 %v1320_v34  ;;  %v1358_v34 = vld [vmem:[#allocation8 + $0xb0] ss:$8 sps:$4 sm:$0xff] (!%p1139_p6)  }
  0xc6   : > { %902 = vmatpush1.bf16.msra.mxu0 (!%p1139_p6), %v1325_v48  ;;  %v1364_v48 = vld [vmem:[#allocation8 + $0xd0] ss:$8 sps:$4 sm:$0xff] (!%p1139_p6)  }
  0xc7   : > { %903 = vmatprep.subr.bf16.mxu0 (!%p1139_p6), %v1326_v49 }
  0xca   : > { %904 = vmatpush1.bf16.msra.mxu0 (!%p1139_p6), %v1328_v50 }
  0xcb   : > { %905 = vmatprep.subr.bf16.mxu0 (!%p1139_p6), %v1329_v51  ;;  %v1365_v51 = vld [vmem:[#allocation8 + $0xe4] ss:$8 sps:$4 sm:$0xff] (!%p1139_p6)  }
  0xce   : > { %906 = vmatpush1.bf16.msra.mxu0 (!%p1139_p6), %v1331_v52 }
  0xcf   : > { %907 = vmatprep.subr.bf16.mxu0 (!%p1139_p6), %v1332_v53 }
  0xd2   : > { %908 = vmatpush1.bf16.msra.mxu0 (!%p1139_p6), %v1334_v54 }
  0xd3   : > { %909 = vmatprep.subr.bf16.mxu0 (!%p1139_p6), %v1335_v56 }
  0xd6   : > { %910 = vmatpush1.bf16.msra.mxu0 (!%p1139_p6), %v1337_v57  ;;  %v1367_v57 = vld [vmem:[#allocation8 + $0xe0] ss:$8 sps:$4 sm:$0xff] (!%p1139_p6)  }
  0xd7   : > { %911 = vmatprep.subr.bf16.mxu0 (!%p1139_p6), %v1338_v59  ;;  %v1368_v59 = vld [vmem:[#allocation8 + $0xf4] ss:$8 sps:$4 sm:$0xff] (!%p1139_p6)  }
  0xda   : > { %912 = vmatpush1.bf16.msra.mxu0 (!%p1139_p6), %v1340_v60 }
  0xdb   : > { %913 = vmatprep.subr.bf16.mxu0 (!%p1139_p6), %v1341_v63 }
  0xde   : > { %914 = vmatpush1.bf16.msra.mxu0 (!%p1139_p6), %v1343_v5 }
  0xdf   : > { %915 = vmatprep.subr.bf16.mxu0 (!%p1139_p6), %v1344_v8 }
  0xe2   : > { %916 = vmatpush1.bf16.msra.mxu0 (!%p1139_p6), %v1346_v13 }
  0xe3   : > { %917 = vmatprep.subr.bf16.mxu0 (!%p1139_p6), %v1347_v16 }
  0xe6   : > { %918 = vmatpush1.bf16.msra.mxu0 (!%p1139_p6), %v1349_v23 }
  0xe7   : > { %919 = vmatprep.subr.bf16.mxu0 (!%p1139_p6), %v1350_v26 }
  0xea   : > { %920 = vmatpush1.bf16.msra.mxu0 (!%p1139_p6), %v1352_v29 }
  0xeb   : > { %921 = vmatprep.subr.bf16.mxu0 (!%p1139_p6), %v1353_v30  ;;  %v729_v30 = vld [vmem:[%s1988_s4] sm:$0x3] (!%p1139_p6) }
  0xee   : > { %922 = vmatpush1.bf16.msra.mxu0 (!%p1139_p6), %v1355_v31  ;;  %v734_v31 = vrot.slane (!%p1139_p6), %v729_v30, %v623_v61 }
  0xef   : > { %923 = vmatprep.subr.bf16.mxu0 (!%p1139_p6), %v1356_v32 }
  0xf2   : > { %924 = vmatpush1.bf16.msra.mxu0 (!%p1139_p6), %v1358_v34 }
 0x198   : > { %v594_v37 = vpop.f32.mrb[0].mxu0  ;;  %614 = sbr.rel (%p1139_p6) target bundleno = 694 (0x2b6), region = 60 }
 0x199   : > { %v603_v39 = vadd.f32 %v594_v37, %v352_v35  ;;  %v596_v40 = vpop.f32.mrb[1].mxu0 }
 0x19a   : > { %v604_v42 = vadd.f32 %v596_v40, %v353_v36  ;;  %v598_v43 = vpop.f32.mrb[2].mxu0  ;;  %v1359_v36 = vld [vmem:[#allocation8 + $0xc4] ss:$8 sps:$4 sm:$0xff] (!%p1139_p6)  }
 0x19b   : > { %607 = vst [vmem:[#allocation2] sm:$0xff] %v603_v39  ;;  %v605_v44 = vadd.f32 %v598_v43, %v354_v38  ;;  %v600_v45 = vpop.f32.mrb[3].mxu0  ;;  %925 = vmatprep.subr.bf16.mxu0 (!%p1139_p6), %v1359_v36 }
 0x19c   : > { %608 = vst [vmem:[#allocation2 + $0x8] sm:$0xff] %v604_v42  ;;  %v606_v46 = vadd.f32 %v600_v45, %v355_v41  ;;  %v1361_v42 = vld [vmem:[#allocation8 + $0xc0] ss:$8 sps:$4 sm:$0xff] (!%p1139_p6)  }
 0x19d   : > { %609 = vst [vmem:[#allocation2 + $0x10] sm:$0xff] %v605_v44  ;;  %v1362_v44 = vld [vmem:[#allocation8 + $0xd4] ss:$8 sps:$4 sm:$0xff] (!%p1139_p6)   ;;  %926 = vmatpush1.bf16.msra.mxu0 (!%p1139_p6), %v1361_v42 }
 0x19e   : > { %610 = vst [vmem:[#allocation2 + $0x18] sm:$0xff] %v606_v46  ;;  %927 = vmatprep.subr.bf16.mxu0 (!%p1139_p6), %v1362_v44 }
 0x1a1   : > { %928 = vmatpush1.bf16.msra.mxu0 %v1364_v48 }
 0x1a2   : > { %v615_v3 = vld [vmem:[#allocation2] sm:$0xff]  ;;  %929 = vmatprep.subr.bf16.mxu0 %v1365_v51 }
 0x1a3   : > { %v616_v0 = vld [vmem:[#allocation2 + $0x8] sm:$0xff]  ;;  %v1890_v11 = vadd.f32 %v624_v6, %v615_v3 }
 0x1a4   : > { %v617_v4 = vld [vmem:[#allocation2 + $0x10] sm:$0xff]  ;;  %v1886_v9 = vadd.f32 %v628_v7, %v616_v0 }
 0x1a5   : > { %v618_v1 = vld [vmem:[#allocation2 + $0x18] sm:$0xff]  ;;  %v1892_v12 = vadd.f32 %v624_v6, %v617_v4  ;;  %v639_v17 = vand.u32 2147483647, %v1890_v11  ;;  %v635_v16 = vmax.f32 %v1890_v11, 0.0  ;;  %930 = vmatpush1.bf16.msra.mxu0 %v1367_v57 }
 0x1a6   : > { %v1888_v10 = vadd.f32 %v628_v7, %v618_v1  ;;  %v640_v14 = vand.u32 2147483647, %v1886_v9  ;;  %v636_v1 = vmax.f32 %v1886_v9, 0.0  ;;  %v1370_v9 = vld [vmem:[#allocation8 + $0xf0] ss:$8 sps:$4 sm:$0xff]   ;;  %931 = vmatprep.subr.bf16.mxu0 %v1368_v59 }
 0x1a7   : > { %v641_v18 = vand.u32 2147483647, %v1892_v12  ;;  %v643_v21 = vsub.f32 0.0, %v639_v17 }
 0x1a8   : > { %v642_v15 = vand.u32 2147483647, %v1888_v10  ;;  %v644_v19 = vsub.f32 0.0, %v640_v14  ;;  %v638_v6 = vmax.f32 %v1888_v10, 0.0 }
 0x1a9   : > { %v645_v22 = vsub.f32 0.0, %v641_v18  ;;  %v647_v27 = vmul.f32 1.442695, %v643_v21  ;;  %932 = vmatpush1.bf16.msra.mxu0 %v1370_v9 }
 0x1aa   : > { %v646_v20 = vsub.f32 0.0, %v642_v15  ;;  %v649_v24 = vmul.f32 1.442695, %v644_v19 }
 0x1ab   : > { %v651_v28 = vmul.f32 1.442695, %v645_v22  ;;  %v637_v22 = vmax.f32 %v1892_v12, 0.0  ;;  %v738_v12 = vrot.slane %v729_v30, %v627_v62 }
 0x1ac   : > { %v653_v25 = vmul.f32 1.442695, %v646_v20  ;;  %1371 = vpow2.f32 %v649_v24 }
 0x1ae   : > { %1373 = vpow2.f32 %v653_v25 }
 0x1af   : > { %1375 = vpow2.f32 %v647_v27 }
 0x1b0   : > { %1377 = vpow2.f32 %v651_v28 }
 0x1b6   : > { %v1372_v33 = vpop.eup %1371 }
 0x1b7   : > { %v664_v37 = vadd.f32 1.0, %v1372_v33  ;;  %v667_v43 = vmul.f32 -0.5, %v1372_v33  ;;  %v670_v52 = vand.u32 2147483647, %v1372_v33 }
 0x1b8   : > { %v1374_v35 = vpop.eup %1373 }
 0x1b9   : > { %v1376_v38 = vpop.eup %1375  ;;  %v682_v39 = vadd.f32 1.0, %v1374_v35  ;;  %1379 = vlog2.f32 %v664_v37  ;;  %v685_v45 = vmul.f32 -0.5, %v1374_v35  ;;  %v668_v49 = vadd.f32 1.0, %v667_v43 }
 0x1ba   : > { %v1378_v40 = vpop.eup %1377  ;;  %v655_v41 = vadd.f32 1.0, %v1376_v38  ;;  %v658_v47 = vmul.f32 -0.5, %v1376_v38  ;;  %v688_v54 = vand.u32 2147483647, %v1374_v35  ;;  %v661_v56 = vand.u32 2147483647, %v1376_v38 }
 0x1bb   : > { %1381 = vlog2.f32 %v682_v39  ;;  %v673_v46 = vadd.f32 1.0, %v1378_v40  ;;  %v676_v50 = vmul.f32 -0.5, %v1378_v40  ;;  %v686_v53 = vadd.f32 1.0, %v685_v45 }
 0x1bc   : > { %1383 = vlog2.f32 %v655_v41  ;;  %v659_v55 = vadd.f32 1.0, %v658_v47  ;;  %v669_v60 = vmul.f32 %v1372_v33, %v668_v49  ;;  %vm1899_vm0 = vcmp.lt.f32.partialorder %v670_v52, 0.0004427343 }
 0x1bd   : > { %1385 = vlog2.f32 %v673_v46  ;;  %v677_v63 = vadd.f32 1.0, %v676_v50  ;;  %v687_v3 = vmul.f32 %v1374_v35, %v686_v53  ;;  %v679_v4 = vand.u32 2147483647, %v1378_v40 }
 0x1be   : > { %vm1904_vm1 = vcmp.lt.f32.partialorder %v688_v54, 0.0004427343  ;;  %v660_v13 = vmul.f32 %v1376_v38, %v659_v55  ;;  %vm662_vm2 = vcmp.lt.f32.partialorder %v661_v56, 0.0004427343 }
 0x1bf   : > { %v678_v19 = vmul.f32 %v1378_v40, %v677_v63  ;;  %vm680_vm3 = vcmp.lt.f32.partialorder %v679_v4, 0.0004427343 }
 0x1c3   : > { %v1380_v0 = vpop.eup %1379 }
 0x1c4   : > { %v666_v7 = vmul.f32 0.6931472, %v1380_v0 }
 0x1c5   : > { %v1382_v5 = vpop.eup %1381 }
 0x1c6   : > { %v1384_v14 = vpop.eup %1383  ;;  %v684_v15 = vmul.f32 0.6931472, %v1382_v5  ;;  %v672_v17 = vsel %vm1899_vm0, %v669_v60, %v666_v7 }
 0x1c7   : > { %v657_v18 = vmul.f32 0.6931472, %v1384_v14  ;;  %v1386_v20 = vpop.eup %1385  ;;  %v692_v21 = vadd.f32 %v672_v17, %v636_v1 }
 0x1c8   : > { %v690_v10 = vsel %vm1904_vm1, %v687_v3, %v684_v15  ;;  %v675_v11 = vmul.f32 0.6931472, %v1386_v20 }
 0x1c9   : > { %v694_v23 = vadd.f32 %v690_v10, %v638_v6  ;;  %v663_v24 = vsel %vm662_vm2, %v660_v13, %v657_v18 }
 0x1ca   : > { %v691_v25 = vadd.f32 %v663_v24, %v635_v16  ;;  %v681_v27 = vsel %vm680_vm3, %v678_v19, %v675_v11 }
 0x1cb   : > { %v696_v26 = vpack.c.bf16 %v694_v23, %v692_v21  ;;  %v693_v28 = vadd.f32 %v681_v27, %v637_v22 }
 0x1cd   : > { %933 = vmatprep.mubr.bf16.mxu0 %v696_v26  ;;  %v695_v29 = vpack.c.bf16 %v693_v28, %v691_v25 }
 0x1cf   : > { %934 = vmatmul.mubr.bf16.vlgmr.msra.gmra.mrb[0].mxu0 %v695_v29 }
 0x2a2   : > { %v935_v32 = vpop.f32.mrb[0].mxu0 }
 0x2a3   : > { %v936_v33 = vadd.f32 %v935_v32, %v734_v31  ;;  %v937_v34 = vpop.f32.mrb[1].mxu0 }
 0x2a4   : > { %v938_v35 = vadd.f32 %v937_v34, %v738_v12  ;;  %v939_v36 = vpop.f32.mrb[2].mxu0 }
 0x2a5   : > { %944 = vst [vmem:[#allocation9] sm:$0xff] %v936_v33  ;;  %v940_v37 = vadd.f32 %v939_v36, %v734_v31  ;;  %v941_v38 = vpop.f32.mrb[3].mxu0 }
 0x2a6   : > { %v946_v39 = vmul.f32 1.442695, %v938_v35  ;;  %v942_v40 = vadd.f32 %v941_v38, %v738_v12 }
 0x2a7   : > { %945 = vst [vmem:[#allocation9 + $0x8] sm:$0xff] %v940_v37 }
 0x2a8   : > { %1387 = vpow2.f32 %v946_v39  ;;  %v948_v41 = vmul.f32 1.442695, %v942_v40 }
 0x2aa   : > { %1389 = vpow2.f32 %v948_v41 }
 0x2b2   : > { %v1388_v42 = vpop.eup %1387 }
 0x2b3   : > { %950 = vst [vmem:[#allocation10] sm:$0xff] %v1388_v42 }
 0x2b4   : > { %v1390_v61 = vpop.eup %1389 }
 0x2b5   : > { %951 = vst [vmem:[#allocation10 + $0x8] sm:$0xff] %v1390_v61 }
 0x2b6 PF: > { %p1211_p8 = scmp.eq.s32.totalorder %s1674_s27, 3  ;;  %s1606_s16 = smov [#allocation9]  }
 0x2b7   : > { %s961_s9 = sshll.u32 %s1606_s16, 4  ;;  %s962_s9 = int_to_ptr.vmem [resolvable:$true] %s961_s9 }
 0x2b8   : > { %s1479_s18 = scalar_lea.vmem %s962_s9, 256  ;;  %p1486_p0 = scmp.lt.s32.totalorder %s962_s9, %s962_s9 }
 0x2b9   : > { %p1480_p13 = scmp.ne.s32.totalorder %s962_s9, %s1479_s18  ;;  %p1487_p4 = scmp.lt.s32.totalorder %s1479_s18, %s1479_s18 }
 0x2bb   : > { %p1481_p1 = pnand %p1480_p13, %p1211_p8  ;;  %p1488_p7 = por %p1487_p4, %p1486_p0 }
 0x2bd   : > { %p1482_p2 = pneg %p1481_p1 }
 0x2bf   : > { %p1489_p9 = pnand %p1488_p7, %p1482_p2 }
 0x2c1   : > { %1492 = shalt.err (!%p1489_p9)
}
 0x2c2   : > { %s1493_s3 = scalar_lea.hbm %s1989_s5, 256 }
 0x2c3   : > { %p1494_p12 = scmp.ne.s32.totalorder %s1989_s5, %s1493_s3  ;;  %p1499_p10 = scmp.lt.u32.totalorder %s1493_s3, %s1989_s5 }
 0x2c5   : > { %p1495_p5 = pnand %p1494_p12, %p1211_p8 }
 0x2c7   : > { %p1496_p11 = pneg %p1495_p5 }
 0x2c9   : > { %p1501_p3 = pnand %p1499_p10, %p1496_p11 }
 0x2cb   : > { %1504 = shalt.err (!%p1501_p3)
}
 0x2cc   : > { %s1607_s28 = smov 128   ;;  %s1608_s14 = smov 8  }
 0x2cd   : > { %1190 = dma.vmem_to_hbm [thread:$0]  (%p1211_p8), %s962_s9, 256, %s1989_s5, [#allocation5], %s1607_s28, %s1607_s28, %s1608_s14  }
 0x2ce   : > { %s1609_s13 = smov [#allocation10]  }
 0x2cf   : > { %s977_s0 = sshll.u32 %s1609_s13, 4  ;;  %s978_s0 = int_to_ptr.vmem [resolvable:$true] %s977_s0 }
 0x2d0   : > { %s1505_s11 = scalar_lea.vmem %s978_s0, 256  ;;  %p1512_p2 = scmp.lt.s32.totalorder %s978_s0, %s978_s0 }
 0x2d1   : > { %p1506_p6 = scmp.ne.s32.totalorder %s978_s0, %s1505_s11  ;;  %p1513_p0 = scmp.lt.s32.totalorder %s1505_s11, %s1505_s11 }
 0x2d3   : > { %p1507_p13 = pnand %p1506_p6, %p1211_p8  ;;  %p1514_p4 = por %p1513_p0, %p1512_p2 }
 0x2d5   : > { %p1508_p1 = pneg %p1507_p13 }
 0x2d7   : > { %p1515_p7 = pnand %p1514_p4, %p1508_p1 }
 0x2d9   : > { %1518 = shalt.err (!%p1515_p7)
}
 0x2da   : > { %s1519_s30 = scalar_lea.hbm %s1990_s6, 256 }
 0x2db   : > { %p1520_p9 = scmp.ne.s32.totalorder %s1990_s6, %s1519_s30  ;;  %p1525_p11 = scmp.lt.u32.totalorder %s1519_s30, %s1990_s6 }
 0x2dd   : > { %p1521_p12 = pnand %p1520_p9, %p1211_p8 }
 0x2df   : > { %p1522_p5 = pneg %p1521_p12 }
 0x2e1   : > { %p1527_p10 = pnand %p1525_p11, %p1522_p5 }
 0x2e3   : > { %1530 = shalt.err (!%p1527_p10)
}
 0x2e4   : > { %1192 = dma.vmem_to_hbm [thread:$0]  (%p1211_p8), %s978_s0, 256, %s1990_s6, [#allocation11], %s1607_s28, %s1607_s28, %s1608_s14  }
 0x2e5   : > { %1568 = dma.done.wait (%p1211_p8), [#allocation5], 256  }
 0x2e6   : > { %1570 = vsyncadd (%p1211_p8), [#allocation5], 4294967040 }
 0x2e7   : > { %1572 = dma.done.wait (%p1211_p8), [#allocation11], 256  }
 0x2e8   : > { %1574 = vsyncadd (%p1211_p8), [#allocation11], 4294967040 }
 0x2e9 PF: > { %s25_s26 = sadd.s32 1, %s1597_s26   ;;  %s2022_s3 = sld [smem:[#allocation18_spill]] }
 0x2ea   : > { %p22_p3 = scmp.ge.s32.totalorder %s25_s26, 6   ;;  %s2023_s12 = sld [smem:[#allocation17_spill]] }
 0x2eb   : > { %s2024_s21 = smov %s1581_s22  ;;  %s2025_s22 = smov %s1585_s23 }
 0x2ec   : > { %s2027_s24 = smov %s1593_s25  ;;  %24 = sbr.rel (!%p22_p3) target bundleno = 11 (0xb), region = 112 }
 0x2ef   : > { %s2026_s23 = smov %s2022_s3 }
 0x2f0   : > { %s2028_s25 = smov %s2023_s12 }
 0x2f3   :  { %997 = vsyncpa [#allocation4], 1 }
 0x2f4   :  { %999 = vsyncpa [#allocation4 + $0x1], 1 }
 0x2f5   :  { %1000 = vsyncpa [#allocation7], 1 }
 0x2f6   :  { %1002 = vsyncpa [#allocation7 + $0x1], 1 }
 0x2f7   :  { %1003 = vsyncpa [#allocation5], 1 }
 0x2f8   :  { %1005 = vsyncpa [#allocation5 + $0x1], 1 }
 0x2f9   :  { %1006 = vsyncpa [#allocation11], 1 }

</bundles_post_ra>
